<compile_context>
chip_gen: v5e
topology: v5e:2x2
jax: 0.10.0
libtpu: 0.0.40
codegen_flags: <defaults>
</compile_context>

<pallas_src>
import functools
import math

import jax
import jax.numpy as jnp
from jax.experimental import pallas as pl
from jax.experimental.pallas import tpu as pltpu


@functools.lru_cache(maxsize=None)
def _vmem_limit():
    # Leave ~25% headroom for Mosaic internal scratch; important on v7x (64 MiB/TC).
    try:
        cap = pltpu.get_tpu_info().vmem_capacity_bytes
    except Exception:
        cap = 64 * 1024 * 1024
    return min(int(cap * 3 // 4), 96 * 1024 * 1024)


def _fit(tile, dim):
    """Clamp a requested tile size to a divisor of `dim` (toy dims are pow2)."""
    t = max(1, min(tile, dim))
    while dim % t:
        t //= 2
    return t


def _pick_head_group(num_heads, dh):
    """Smallest divisor of H whose hg*dh is a lane multiple (lane-dense output)."""
    for hg in range(1, num_heads + 1):
        if num_heads % hg == 0 and (hg * dh) % 128 == 0:
            return hg
    return num_heads


def _layernorm(v, g, b, eps=1e-5):
    # f32 statistics (keep LN math in f32 even with bf16 activations).
    m = jnp.mean(v, axis=-1, keepdims=True)
    c = v - m
    var = jnp.mean(c * c, axis=-1, keepdims=True)
    return c * jax.lax.rsqrt(var + eps) * g + b


# ----------------------------------------------------------------------------
# Kernel 1: Conv1d(K=3) + bias + GELU (+ optional positional embedding)
#   - no im2col in HBM: three shifted (TQ, Cin) x (Cin, Cout) matmuls
#   - output tiled over T_out (grid axis), lane-dense bf16 stores
# ----------------------------------------------------------------------------
def _conv3_gelu_kernel(*args, tq, shifts, n_src, add_pos):
    # args = [x_src_0..x_src_{n_src-1}, w_tap0, w_tap1, w_tap2, bias, (pos), out]
    xs = args[:n_src]
    w_refs = args[n_src:n_src + 3]
    b_ref = args[n_src + 3]
    pos_ref = args[n_src + 4] if add_pos else None
    o_ref = args[-1]

    j = pl.program_id(1)
    base = pl.multiple_of(j * tq, tq)           # aligned dynamic start

    # One aligned window load per source; taps are cheap static shifted slices.
    max_off = [0] * n_src
    for src, off in shifts:
        max_off[src] = max(max_off[src], off)
    wins = [xs[s][0, pl.ds(base, tq + max_off[s]), :] for s in range(n_src)]

    y = b_ref[...].astype(jnp.float32)          # (1, Cout) -> broadcast once
    for (src, off), w_ref in zip(shifts, w_refs):
        xk = jax.lax.slice_in_dim(wins[src], off, off + tq, axis=0)   # (tq, Cin) bf16
        y = y + jnp.dot(xk, w_ref[...], preferred_element_type=jnp.float32)
    y = jax.nn.gelu(y, approximate=True)        # TODO(synk): PyTorch uses exact erf GELU
    if add_pos:
        y = y + pos_ref[...].astype(jnp.float32)
    o_ref[0] = y.astype(o_ref.dtype)


def conv1d_gelu(x_btc, w, b, *, stride, tq, pos=None):
    """x_btc: (B, T, Cin) bf16, w: (3, Cin, Cout), b: (Cout,) -> (B, T_out, Cout) bf16."""
    B, T, Cin = x_btc.shape
    K, _, Cout = w.shape
    assert K == 3

    # Pad the contraction dim to a lane multiple (n_mels 80 -> 128 at real sizes):
    # zero-padded columns contribute nothing, MXU rows are fully used.
    cpad = (-Cin) % 128
    if cpad:
        x_btc = jnp.pad(x_btc, ((0, 0), (0, 0), (0, cpad)))
        w = jnp.pad(w, ((0, 0), (0, cpad), (0, 0)))
        Cin += cpad

    xp = jnp.pad(x_btc, ((0, 0), (1, 1), (0, 0)))            # conv pad=1
    T_out = (T + 2 - K) // stride + 1
    assert T_out % tq == 0, "pick tq dividing T_out (pad/mask tail at real sizes)"
    nt = T_out // tq

    if stride == 1:
        srcs = [xp]                                          # out[t] uses xp[t..t+2]
        shifts = ((0, 0), (0, 1), (0, 2))
    elif stride == 2:
        # Even/odd phase split: out[t] = xp[2t]@W0 + xp[2t+1]@W1 + xp[2t+2]@W2.
        srcs = [xp[:, 0::2, :], xp[:, 1::2, :]]
        shifts = ((0, 0), (1, 0), (0, 1))
    else:
        raise ValueError(stride)

    add_pos = pos is not None
    args, in_specs = [], []
    for s in srcs:
        # Full (T-ish, Cin) block per batch, resident across the T_out tiles.
        in_specs.append(pl.BlockSpec((1,) + s.shape[1:], lambda bi, ji: (bi, 0, 0)))
        args.append(s)
    for k in range(3):
        in_specs.append(pl.BlockSpec((Cin, Cout), lambda bi, ji: (0, 0)))
        args.append(w[k].astype(jnp.bfloat16))
    in_specs.append(pl.BlockSpec((1, Cout), lambda bi, ji: (0, 0)))
    args.append(b.reshape(1, Cout).astype(jnp.float32))
    if add_pos:
        in_specs.append(pl.BlockSpec((tq, Cout), lambda bi, ji: (ji, 0)))
        args.append(pos.astype(jnp.float32))

    return pl.pallas_call(
        functools.partial(_conv3_gelu_kernel, tq=tq, shifts=shifts,
                          n_src=len(srcs), add_pos=add_pos),
        out_shape=jax.ShapeDtypeStruct((B, T_out, Cout), jnp.bfloat16),
        grid=(B, nt),
        in_specs=in_specs,
        out_specs=pl.BlockSpec((1, tq, Cout), lambda bi, ji: (bi, ji, 0)),
        compiler_params=pltpu.CompilerParams(
            dimension_semantics=("parallel", "parallel"),
            vmem_limit_bytes=_vmem_limit()),
    )(*args)


# ----------------------------------------------------------------------------
# Kernel 2: LayerNorm + fused QKV projection (one (D,3D) matmul), head-major out
# ----------------------------------------------------------------------------
def _ln_qkv_kernel(x_ref, g_ref, bln_ref, wqkv_ref, bqkv_ref,
                   q_ref, k_ref, v_ref, *, num_heads):
    tq, D = x_ref.shape[1], x_ref.shape[2]
    dh = D // num_heads
    x = x_ref[0].astype(jnp.float32)                               # (tq, D)
    h = _layernorm(x, g_ref[...], bln_ref[...]).astype(wqkv_ref.dtype)
    y = jnp.dot(h, wqkv_ref[...], preferred_element_type=jnp.float32) + bqkv_ref[...]
    y = y.astype(q_ref.dtype)                                      # (tq, 3D) bf16

    def heads(z):                                                  # (tq,D)->(H,tq,dh)
        return jnp.transpose(z.reshape(tq, num_heads, dh), (1, 0, 2))

    q_ref[0] = heads(y[:, :D])
    k_ref[0] = heads(y[:, D:2 * D])
    v_ref[0] = heads(y[:, 2 * D:])


def ln_qkv(x, p, *, tq, num_heads):
    B, T, D = x.shape
    dh = D // num_heads
    nt = T // tq
    xspec = pl.BlockSpec((1, tq, D), lambda b, t: (b, t, 0))
    vspec = pl.BlockSpec((1, D), lambda b, t: (0, 0))
    ospec = pl.BlockSpec((1, num_heads, tq, dh), lambda b, t: (b, 0, t, 0))
    out_sd = jax.ShapeDtypeStruct((B, num_heads, T, dh), jnp.bfloat16)
    return pl.pallas_call(
        functools.partial(_ln_qkv_kernel, num_heads=num_heads),
        out_shape=(out_sd, out_sd, out_sd),
        grid=(B, nt),
        in_specs=[xspec, vspec, vspec,
                  pl.BlockSpec((D, 3 * D), lambda b, t: (0, 0)),
                  pl.BlockSpec((1, 3 * D), lambda b, t: (0, 0))],
        out_specs=(ospec, ospec, ospec),
        compiler_params=pltpu.CompilerParams(
            dimension_semantics=("parallel", "parallel"),
            vmem_limit_bytes=_vmem_limit()),
    )(x, p["ln1_g"], p["ln1_b"], p["w_qkv"], p["b_qkv"])


# ----------------------------------------------------------------------------
# Kernel 3: flash attention — K/V whole-sequence resident per (batch, head-group),
#           in-kernel kv loop with online softmax carried in registers
# ----------------------------------------------------------------------------
def _flash_attn_kernel(q_ref, k_ref, v_ref, o_ref, *, tk, scale):
    hg, tq, dh = q_ref.shape[1:]
    T = k_ref.shape[2]
    nk = T // tk

    # Pre-scale q once (not per kv step).
    q = (q_ref[0].astype(jnp.float32) * scale).astype(jnp.bfloat16)   # (hg, tq, dh)

    def body(i, carry):
        m, l, acc = carry
        off = pl.multiple_of(i * tk, tk)
        k = k_ref[0, :, pl.ds(off, tk), :]                             # (hg, tk, dh)
        v = v_ref[0, :, pl.ds(off, tk), :]
        s = jnp.einsum('hqd,hkd->hqk', q, k,
                       preferred_element_type=jnp.float32)             # (hg,tq,tk) f32
        m_new = jnp.maximum(m, s.max(axis=-1))
        alpha = jnp.exp(m - m_new)
        p = jnp.exp(s - m_new[..., None])
        l = alpha * l + p.sum(axis=-1)
        acc = alpha[..., None] * acc + jnp.einsum(
            'hqk,hkd->hqd', p.astype(v.dtype), v,
            preferred_element_type=jnp.float32)
        return m_new, l, acc

    m0 = jnp.full((hg, tq), -jnp.inf, jnp.float32)
    l0 = jnp.zeros((hg, tq), jnp.float32)
    a0 = jnp.zeros((hg, tq, dh), jnp.float32)
    m, l, acc = jax.lax.fori_loop(0, nk, body, (m0, l0, a0), unroll=(nk <= 8))

    out = acc * pl.reciprocal(l, approx=True)[..., None]               # EUP recip
    # (hg, tq, dh) -> lane-dense (tq, hg*dh) slab of the (B, T, D) output.
    o_ref[0] = jnp.transpose(out, (1, 0, 2)).reshape(tq, hg * dh).astype(o_ref.dtype)


def flash_attention(q, k, v, *, tq, tk, hg):
    B, H, T, dh = q.shape
    D = H * dh
    G = H // hg
    nq = T // tq
    assert T % tk == 0
    qspec = pl.BlockSpec((1, hg, tq, dh), lambda b, g, qi: (b, g, qi, 0))
    kvspec = pl.BlockSpec((1, hg, T, dh), lambda b, g, qi: (b, g, 0, 0))  # resident K/V
    ospec = pl.BlockSpec((1, tq, hg * dh), lambda b, g, qi: (b, qi, g))
    return pl.pallas_call(
        functools.partial(_flash_attn_kernel, tk=tk, scale=dh ** -0.5),
        out_shape=jax.ShapeDtypeStruct((B, T, D), jnp.bfloat16),
        grid=(B, G, nq),
        in_specs=[qspec, kvspec, kvspec],
        out_specs=ospec,
        compiler_params=pltpu.CompilerParams(
            dimension_semantics=("parallel", "parallel", "parallel"),
            vmem_limit_bytes=_vmem_limit()),
    )(q, k, v)


# ----------------------------------------------------------------------------
# Kernel 4: attention out-proj + residual + LN2 + MLP(GELU) + residual,
#           tiled over time AND the FF dimension (accumulator in VMEM);
#           optionally folds the encoder's ln_post into the epilogue.
# ----------------------------------------------------------------------------
def _proj_mlp_kernel(*args, final_ln):
    if final_ln:
        (x_ref, a_ref, wo_ref, bo_ref, g2_ref, be2_ref,
         w1_ref, b1_ref, w2_ref, b2_ref, gf_ref, bf_ref,
         o_ref, h_sc, acc_sc) = args
    else:
        (x_ref, a_ref, wo_ref, bo_ref, g2_ref, be2_ref,
         w1_ref, b1_ref, w2_ref, b2_ref,
         o_ref, h_sc, acc_sc) = args
        gf_ref = bf_ref = None

    f = pl.program_id(2)

    @pl.when(f == 0)
    def _():
        x = x_ref[0].astype(jnp.float32)                     # residual stream (f32)
        x1 = x + jnp.dot(a_ref[0], wo_ref[...],
                         preferred_element_type=jnp.float32) + bo_ref[...]
        h_sc[...] = _layernorm(x1, g2_ref[...], be2_ref[...]).astype(h_sc.dtype)
        acc_sc[...] = x1 + b2_ref[...]                       # residual + final bias

    h = h_sc[...]                                            # (TQ, D) bf16
    t = jnp.dot(h, w1_ref[...], preferred_element_type=jnp.float32) + b1_ref[...]
    t = jax.nn.gelu(t, approximate=True).astype(h.dtype)     # (TQ, TF) bf16
    acc_sc[...] += jnp.dot(t, w2_ref[...], preferred_element_type=jnp.float32)

    @pl.when(f == pl.num_programs(2) - 1)
    def _():
        y = acc_sc[...]
        if final_ln:
            y = _layernorm(y, gf_ref[...], bf_ref[...])      # fused ln_post
        o_ref[0] = y.astype(o_ref.dtype)


def attn_proj_mlp(x, attn, p, *, tq, tf, final_ln=None):
    B, T, D = x.shape
    FF = p["mlp_w1"].shape[1]
    nt, nf = T // tq, FF // tf
    xspec = pl.BlockSpec((1, tq, D), lambda b, t, f: (b, t, 0))
    dspec = pl.BlockSpec((D, D), lambda b, t, f: (0, 0))
    vspec = pl.BlockSpec((1, D), lambda b, t, f: (0, 0))
    args = [x, attn, p["wo"], p["bo"], p["ln2_g"], p["ln2_b"],
            p["mlp_w1"], p["mlp_b1"], p["mlp_w2"], p["mlp_b2"]]
    in_specs = [xspec, xspec, dspec, vspec, vspec, vspec,
                pl.BlockSpec((D, tf), lambda b, t, f: (0, f)),   # w1 N-tile
                pl.BlockSpec((1, tf), lambda b, t, f: (0, f)),   # b1 tile
                pl.BlockSpec((tf, D), lambda b, t, f: (f, 0)),   # w2 K-tile
                vspec]
    if final_ln is not None:
        args += [final_ln[0], final_ln[1]]
        in_specs += [vspec, vspec]
    return pl.pallas_call(
        functools.partial(_proj_mlp_kernel, final_ln=final_ln is not None),
        out_shape=jax.ShapeDtypeStruct((B, T, D), jnp.bfloat16),
        grid=(B, nt, nf),
        in_specs=in_specs,
        out_specs=xspec,
        scratch_shapes=[pltpu.VMEM((tq, D), jnp.bfloat16),   # LN2(x1)
                        pltpu.VMEM((tq, D), jnp.float32)],   # output accumulator
        compiler_params=pltpu.CompilerParams(
            dimension_semantics=("parallel", "parallel", "arbitrary"),
            vmem_limit_bytes=_vmem_limit()),
    )(*args)


# ----------------------------------------------------------------------------
# Parameter construction (deterministic, synthetic) — weights bf16, LN/bias f32
# ----------------------------------------------------------------------------
def sinusoids(length, channels):
    log_timescale = math.log(10000.0) / max(channels // 2 - 1, 1)
    inv = jnp.exp(-log_timescale * jnp.arange(channels // 2, dtype=jnp.float32))
    t = jnp.arange(length, dtype=jnp.float32)[:, None] * inv[None, :]
    return jnp.concatenate([jnp.sin(t), jnp.cos(t)], axis=1)


def init_params(key, n_mels, d_model, n_heads, d_ff, n_layers, t_pos):
    wdt = jnp.bfloat16
    keys = jax.random.split(key, 2 + 6 * n_layers)
    s = 0.05
    params = {
        "conv1_w": (s * jax.random.normal(keys[0], (3, n_mels, d_model))).astype(wdt),
        "conv1_b": jnp.zeros((d_model,), jnp.float32),
        "conv2_w": (s * jax.random.normal(keys[1], (3, d_model, d_model))).astype(wdt),
        "conv2_b": jnp.zeros((d_model,), jnp.float32),
        "pos": sinusoids(t_pos, d_model),                    # f32, added once
        "lnf_g": jnp.ones((1, d_model), jnp.float32),
        "lnf_b": jnp.zeros((1, d_model), jnp.float32),
        "layers": [],
    }
    ki = 2
    for _ in range(n_layers):
        wq = s * jax.random.normal(keys[ki + 0], (d_model, d_model))
        wk = s * jax.random.normal(keys[ki + 1], (d_model, d_model))
        wv = s * jax.random.normal(keys[ki + 2], (d_model, d_model))
        lp = {
            "ln1_g": jnp.ones((1, d_model), jnp.float32),
            "ln1_b": jnp.zeros((1, d_model), jnp.float32),
            # Fused QKV: one (D, 3D) matmul; Whisper's key projection has no
            # bias -> the middle segment of b_qkv stays structurally zero.
            "w_qkv": jnp.concatenate([wq, wk, wv], axis=1).astype(wdt),
            "b_qkv": jnp.zeros((1, 3 * d_model), jnp.float32),
            "wo": (s * jax.random.normal(keys[ki + 3], (d_model, d_model))).astype(wdt),
            "bo": jnp.zeros((1, d_model), jnp.float32),
            "ln2_g": jnp.ones((1, d_model), jnp.float32),
            "ln2_b": jnp.zeros((1, d_model), jnp.float32),
            "mlp_w1": (s * jax.random.normal(keys[ki + 4], (d_model, d_ff))).astype(wdt),
            "mlp_b1": jnp.zeros((1, d_ff), jnp.float32),
            "mlp_w2": (s * jax.random.normal(keys[ki + 5], (d_ff, d_model))).astype(wdt),
            "mlp_b2": jnp.zeros((1, d_model), jnp.float32),
        }
        ki += 6
        params["layers"].append(lp)
    return params


# ----------------------------------------------------------------------------
# Forward pass (Whisper-style audio encoder — the hot path of `transcribe`)
# ----------------------------------------------------------------------------
def whisperx_encoder_forward(x_ncw, params, *, num_heads,
                             tq=256, tk=512, tf=512, tq_mlp=512, tq_conv=512):
    # layout: PyTorch-style NCW mel features in; compute in (B, T, C) bf16 so the
    # channel dim maps onto TPU lanes (D multiple of 128 -> lane-dense stores).
    x = jnp.transpose(x_ncw, (0, 2, 1)).astype(jnp.bfloat16)           # (B, T, n_mels)
    B, T_in, _ = x.shape
    x = conv1d_gelu(x, params["conv1_w"], params["conv1_b"], stride=1,
                    tq=_fit(tq_conv, T_in))
    T_enc = x.shape[1] // 2                                             # conv2 stride 2
    x = conv1d_gelu(x, params["conv2_w"], params["conv2_b"], stride=2,
                    tq=_fit(tq_conv, T_enc), pos=params["pos"])         # + pos, once

    B, T, D = x.shape
    dh = D // num_heads
    hg = _pick_head_group(num_heads, dh)
    tq_a, tk_a, tq_m = _fit(tq, T), _fit(tk, T), _fit(tq_mlp, T)

    layers = params["layers"]
    assert len(layers) >= 1
    for li, lp in enumerate(layers):
        q, k, v = ln_qkv(x, lp, tq=tq_a, num_heads=num_heads)
        attn = flash_attention(q, k, v, tq=tq_a, tk=tk_a, hg=hg)
        last = li == len(layers) - 1
        x = attn_proj_mlp(
            x, attn, lp, tq=tq_m, tf=_fit(tf, lp["mlp_w1"].shape[1]),
            final_ln=(params["lnf_g"], params["lnf_b"]) if last else None)  # ln_post fused
    return x


if __name__ == "__main__":
    # Small stand-ins for Whisper (batch, 80 mels, 3000 frames, D=512..1280).
    B, n_mels, T_in = 2, 16, 64
    D, H, FF, n_layers = 128, 4, 256, 2
    T_enc = T_in // 2                    # conv2 has stride 2

    key = jax.random.PRNGKey(0)
    k_x, k_p = jax.random.split(key)
    x = jax.random.normal(k_x, (B, n_mels, T_in), jnp.float32)   # NCW mel features
    params = init_params(k_p, n_mels, D, H, FF, n_layers, T_enc)

    feats = whisperx_encoder_forward(x, params, num_heads=H)
    jax.block_until_ready(feats)
    assert feats.shape == (B, T_enc, D)
    assert bool(jnp.all(jnp.isfinite(feats.astype(jnp.float32))))
    print("KERNEL_OK")
</pallas_src>

<mosaic_0001>
module attributes {stable_mosaic.version = 11 : i64} {
  func.func @_conv3_gelu_kernel(%arg0: i32, %arg1: i32, %arg2: memref<1x66x128xbf16, #tpu.memory_space<vmem>>, %arg3: memref<128x128xbf16, #tpu.memory_space<vmem>>, %arg4: memref<128x128xbf16, #tpu.memory_space<vmem>>, %arg5: memref<128x128xbf16, #tpu.memory_space<vmem>>, %arg6: memref<1x128xf32, #tpu.memory_space<vmem>>, %arg7: memref<1x64x128xbf16, #tpu.memory_space<vmem>>) attributes {dimension_semantics = [#tpu.dimension_semantics<parallel>, #tpu.dimension_semantics<parallel>], iteration_bounds = array<i64: 2, 1>, scalar_prefetch = 0 : i64, scratch_operands = 0 : i64, tpu.core_type = #tpu.core_type<tc>, window_params = [{transform_indices = @transform_0, window_bounds = array<i64: 1, 66, 128>}, {pipeline_mode = #tpu.pipeline_mode<synchronous>, transform_indices = @transform_1, window_bounds = array<i64: 128, 128>}, {pipeline_mode = #tpu.pipeline_mode<synchronous>, transform_indices = @transform_2, window_bounds = array<i64: 128, 128>}, {pipeline_mode = #tpu.pipeline_mode<synchronous>, transform_indices = @transform_3, window_bounds = array<i64: 128, 128>}, {pipeline_mode = #tpu.pipeline_mode<synchronous>, transform_indices = @transform_4, window_bounds = array<i64: 1, 128>}, {transform_indices = @transform_5, window_bounds = array<i64: 1, 64, 128>}]} {
    %c64_i32 = arith.constant 64 : i32
    %0 = arith.muli %arg1, %c64_i32 : i32
    %1 = tpu.assume_multiple %0, 64 : i32
    %c0 = arith.constant 0 : index
    %2 = arith.index_cast %1 : i32 to index
    %c0_0 = arith.constant 0 : index
    %3 = vector.load %arg2[%c0, %2, %c0_0] : memref<1x66x128xbf16, #tpu.memory_space<vmem>>, vector<1x66x128xbf16>
    %4 = vector.shape_cast %3 : vector<1x66x128xbf16> to vector<66x128xbf16>
    %c0_1 = arith.constant 0 : index
    %c0_2 = arith.constant 0 : index
    %5 = vector.load %arg6[%c0_1, %c0_2] : memref<1x128xf32, #tpu.memory_space<vmem>>, vector<1x128xf32>
    %6 = vector.extract_strided_slice %4 {offsets = [0, 0], sizes = [64, 128], strides = [1, 1]} : vector<66x128xbf16> to vector<64x128xbf16>
    %c0_3 = arith.constant 0 : index
    %c0_4 = arith.constant 0 : index
    %7 = vector.load %arg3[%c0_3, %c0_4] : memref<128x128xbf16, #tpu.memory_space<vmem>>, vector<128x128xbf16>
    %cst = arith.constant dense<0.000000e+00> : vector<64x128xf32>
    %8 = tpu.matmul %6, %7, %cst {dimension_numbers = #tpu.dot_dimension_numbers<[1], [0], [0], [1], [0, 0, 1, 1], [], []>} : vector<64x128xbf16>, vector<128x128xbf16>, vector<64x128xf32> -> vector<64x128xf32>
    %9 = vector.broadcast %5 : vector<1x128xf32> to vector<64x128xf32>
    %10 = arith.addf %9, %8 : vector<64x128xf32>
    %11 = vector.extract_strided_slice %4 {offsets = [1, 0], sizes = [64, 128], strides = [1, 1]} : vector<66x128xbf16> to vector<64x128xbf16>
    %c0_5 = arith.constant 0 : index
    %c0_6 = arith.constant 0 : index
    %12 = vector.load %arg4[%c0_5, %c0_6] : memref<128x128xbf16, #tpu.memory_space<vmem>>, vector<128x128xbf16>
    %cst_7 = arith.constant dense<0.000000e+00> : vector<64x128xf32>
    %13 = tpu.matmul %11, %12, %cst_7 {dimension_numbers = #tpu.dot_dimension_numbers<[1], [0], [0], [1], [0, 0, 1, 1], [], []>} : vector<64x128xbf16>, vector<128x128xbf16>, vector<64x128xf32> -> vector<64x128xf32>
    %14 = arith.addf %10, %13 : vector<64x128xf32>
    %15 = vector.extract_strided_slice %4 {offsets = [2, 0], sizes = [64, 128], strides = [1, 1]} : vector<66x128xbf16> to vector<64x128xbf16>
    %c0_8 = arith.constant 0 : index
    %c0_9 = arith.constant 0 : index
    %16 = vector.load %arg5[%c0_8, %c0_9] : memref<128x128xbf16, #tpu.memory_space<vmem>>, vector<128x128xbf16>
    %cst_10 = arith.constant dense<0.000000e+00> : vector<64x128xf32>
    %17 = tpu.matmul %15, %16, %cst_10 {dimension_numbers = #tpu.dot_dimension_numbers<[1], [0], [0], [1], [0, 0, 1, 1], [], []>} : vector<64x128xbf16>, vector<128x128xbf16>, vector<64x128xf32> -> vector<64x128xf32>
    %18 = arith.addf %14, %17 : vector<64x128xf32>
    %19 = arith.mulf %18, %18 : vector<64x128xf32>
    %20 = arith.mulf %18, %19 : vector<64x128xf32>
    %cst_11 = arith.constant 4.471500e-02 : f32
    %21 = vector.broadcast %cst_11 : f32 to vector<64x128xf32>
    %22 = arith.mulf %21, %20 : vector<64x128xf32>
    %23 = arith.addf %18, %22 : vector<64x128xf32>
    %cst_12 = arith.constant 0.797884583 : f32
    %24 = vector.broadcast %cst_12 : f32 to vector<64x128xf32>
    %25 = arith.mulf %24, %23 : vector<64x128xf32>
    %26 = math.tanh %25 : vector<64x128xf32>
    %cst_13 = arith.constant 1.000000e+00 : f32
    %27 = vector.broadcast %cst_13 : f32 to vector<64x128xf32>
    %28 = arith.addf %27, %26 : vector<64x128xf32>
    %cst_14 = arith.constant 5.000000e-01 : f32
    %29 = vector.broadcast %cst_14 : f32 to vector<64x128xf32>
    %30 = arith.mulf %29, %28 : vector<64x128xf32>
    %31 = arith.mulf %18, %30 : vector<64x128xf32>
    %32 = arith.truncf %31 : vector<64x128xf32> to vector<64x128xbf16>
    %c0_15 = arith.constant 0 : index
    %c0_16 = arith.constant 0 : index
    %c0_17 = arith.constant 0 : index
    %33 = vector.load %arg7[%c0_15, %c0_16, %c0_17] : memref<1x64x128xbf16, #tpu.memory_space<vmem>>, vector<1x64x128xbf16>
    %34 = vector.shape_cast %33 : vector<1x64x128xbf16> to vector<64x128xbf16>
    %35 = vector.shape_cast %32 : vector<64x128xbf16> to vector<1x64x128xbf16>
    tpu.vector_store %arg7[%c0_15, %c0_16, %c0_17], %35 {strides = array<i32>} : memref<1x64x128xbf16, #tpu.memory_space<vmem>>, vector<1x64x128xbf16>,
    return
  }
  func.func @transform_0(%arg0: i32, %arg1: i32) -> (i32, i32, i32) {
    %c0_i32 = arith.constant 0 : i32
    %c0_i32_0 = arith.constant 0 : i32
    %c0_i32_1 = arith.constant 0 : i32
    return %arg0, %c0_i32, %c0_i32_0 : i32, i32, i32
  }
  func.func @transform_1(%arg0: i32, %arg1: i32) -> (i32, i32) {
    %c0_i32 = arith.constant 0 : i32
    %c0_i32_0 = arith.constant 0 : i32
    %c0_i32_1 = arith.constant 0 : i32
    return %c0_i32, %c0_i32_0 : i32, i32
  }
  func.func @transform_2(%arg0: i32, %arg1: i32) -> (i32, i32) {
    %c0_i32 = arith.constant 0 : i32
    %c0_i32_0 = arith.constant 0 : i32
    %c0_i32_1 = arith.constant 0 : i32
    return %c0_i32, %c0_i32_0 : i32, i32
  }
  func.func @transform_3(%arg0: i32, %arg1: i32) -> (i32, i32) {
    %c0_i32 = arith.constant 0 : i32
    %c0_i32_0 = arith.constant 0 : i32
    %c0_i32_1 = arith.constant 0 : i32
    return %c0_i32, %c0_i32_0 : i32, i32
  }
  func.func @transform_4(%arg0: i32, %arg1: i32) -> (i32, i32) {
    %c0_i32 = arith.constant 0 : i32
    %c0_i32_0 = arith.constant 0 : i32
    %c0_i32_1 = arith.constant 0 : i32
    return %c0_i32, %c0_i32_0 : i32, i32
  }
  func.func @transform_5(%arg0: i32, %arg1: i32) -> (i32, i32, i32) {
    %c0_i32 = arith.constant 0 : i32
    %c0_i32_0 = arith.constant 0 : i32
    return %arg0, %arg1, %c0_i32 : i32, i32, i32
  }
}

</mosaic_0001>

<bundles_post_ra>
// kernel: tpu_custom_call.1
= control target key start
LH: loop header
LB: loop body
LE: loop exit
PB: predicated region body
PF: predicated region fallthrough
CT: control target
= control target key end

     0   :  { %10 = vsyncpa [#allocation3], 0  ;;  %s1468_s0 = inlined_call_operand.vmem [shape: bf16[2,66,128], index: 0, kind: input, shape index: {}]   ;;  %s1469_s1 = inlined_call_operand.vmem [shape: bf16[128,128], index: 1, kind: input, shape index: {}]   ;;  %s1470_s2 = inlined_call_operand.vmem [shape: bf16[128,128], index: 2, kind: input, shape index: {}]   ;;  %s1471_s3 = inlined_call_operand.hbm [shape: bf16[128,128], index: 3, kind: input, shape index: {}]   ;;  %s1472_s4 = inlined_call_operand.vmem [shape: f32[1,128], index: 4, kind: input, shape index: {}]   ;;  %s1473_s5 = inlined_call_operand.hbm [shape: bf16[2,64,128], index: 5, kind: output, shape index: {}]  }
   0x1   :  { %11 = vsyncpa [#allocation4], 0 }
   0x2   :  { %13 = vsyncpa [#allocation4 + $0x1], 0  ;;  %s1274_s18 = smov 0   ;;  %s1276_s19 = smov 0  }
   0x3   :  { %s1278_s20 = smov 0   ;;  %s1280_s21 = smov 0  }
   0x4   :  { %s1282_s22 = smov 0   ;;  %s1284_s23 = smov 0  }
   0x5 LB: > { %s851_s24 = sadd.s32 4294967295, %s1237_s23   ;;  %s852_s25 = sadd.s32 4294967294, %s1237_s23   ;;  %s1237_s23 = sphi %s1284_s23, %s19_s23   ;;  %s1233_s22 = sphi %s1282_s22, %s1480_s22   ;;  %s1229_s21 = sphi %s1280_s21, %s1479_s21   ;;  %s1225_s20 = sphi %s1278_s20, %s1478_s20   ;;  %s1221_s19 = sphi %s1276_s19, %s1477_s19   ;;  %s1217_s18 = sphi %s1274_s18, %s1476_s18  }
   0x6   : > { %s31_s26 = sadd.s32 1, %s1233_s22  ;;  %s150_s27 = sadd.s32 1, %s1225_s20 }
   0x7   : > { %p33_p0 = scmp.ge.s32.totalorder %s31_s26, 2  ;;  %p160_p1 = scmp.ne.s32.totalorder %s1225_s20, %s1221_s19 }
   0x8   : > { %p161_p2 = scmp.eq.s32.totalorder %s851_s24, 1  ;;  %p166_p3 = scmp.ne.s32.totalorder %s1221_s19, %s1217_s18 }
   0x9   : > { %s1482_s26 = smov (%p33_p0, %s31_s26), 0  ;;  %p167_p5 = scmp.eq.s32.totalorder %s852_s25, 1 }
   0xa   : > { %p1314_p4 = por %p161_p2, %p160_p1  ;;  %s145_s29 = ssub.s32 %s1233_s22, %s1482_s26 }
   0xb   : > { %p853_p6 = scmp.ge.s32.totalorder %s1237_s23, 1  ;;  %p148_p7 = scmp.eq.s32.totalorder %s145_s29, 0 }
   0xc   : > { %p1321_p8 = por %p167_p5, %p166_p3  ;;  %p174_p9 = scmp.lt.s32.totalorder %s1237_s23, 3 }
   0xd   : > { %s1327_s6 = scalar_select %p148_p7, %s1225_s20, %s150_s27  }
   0xe   : > { %p175_p10 = pnand %p853_p6, %p174_p9  ;;  %p1052_p11 = scmp.eq.s32.totalorder %s851_s24, 0 }
   0xf   : > { %s191_s9 = sshll.u32 %s1471_s3, 4  ;;  %s1239_s10 = smov [#allocation2]   ;;  %s192_s9 = int_to_ptr.hbm [resolvable:$true] %s191_s9 }
  0x10   : > { %p1044_p12 = pneg %p175_p10  ;;  %s193_s11 = sshll.u32 %s1239_s10, 4  ;;  %s194_s11 = int_to_ptr.vmem [resolvable:$true] %s193_s11 }
  0x11   : > { %s1240_s12 = smov 64   ;;  %s1241_s13 = smov 4  }
  0x12   : > { %p1045_p13 = pnand %p1052_p11, %p1044_p12  ;;  %220 = sbr.rel (%p175_p10) target bundleno = 277 (0x115), region = 40 }
  0x14   : > { %1047 = dma.hbm_to_vmem [thread:$0]  (!%p1045_p13), %s192_s9, 1024, %s194_s11, [#allocation3], %s1240_s12, %s1240_s12, %s1241_s13  }
  0x17   : > { %1208 = dma.done.wait (%p1052_p11), [#allocation3], 1024  }
  0x18   : > { %1210 = vsyncadd (%p1052_p11), [#allocation3], 4294966272  ;;  %p249_p0 = scmp.lt.s32.totalorder %s1229_s21, 1  ;;  %v988_v0 = vld [vmem:[%s1469_s1 + $0x38] sm:$0xff]  ;;  %v987_v3 = vld [vmem:[%s1469_s1 + $0x30] sm:$0xff]  ;;  %vm559_vm1 = vcmask 1046528  }
  0x19   : > { %v996_v1 = vld [vmem:[%s1470_s2 + $0x38] sm:$0xff]  ;;  %358 = vmatpush.bf16.msra.mxu0 %v988_v0  ;;  %v995_v4 = vld [vmem:[%s1470_s2 + $0x30] sm:$0xff]  ;;  %1029 = vmatpush.bf16.msra.mxu3 %v988_v0  ;;  %v986_v6 = vld [vmem:[%s1469_s1 + $0x28] sm:$0xff]  ;;  %vm417_vm0 = vsmask.f32 7424  ;;  %s246_s8 = sand.u32 1, %s1221_s19  }
  0x1a   : > { %v1004_v2 = vld [vmem:[#allocation2 + $0x38] sm:$0xff]  ;;  %506 = vmatpush.bf16.msra.mxu1 %v996_v1  ;;  %v1003_v5 = vld [vmem:[#allocation2 + $0x30] sm:$0xff]  ;;  %s250_s7 = scalar_select %p249_p0, %s1229_s21, 1  ;;  %v994_v7 = vld [vmem:[%s1470_s2 + $0x28] sm:$0xff] }
  0x1b   : > { %621 = vmatpush.bf16.msra.mxu2 %v1004_v2  ;;  %v1002_v8 = vld [vmem:[#allocation2 + $0x28] sm:$0xff]  ;;  %v985_v9 = vld [vmem:[%s1469_s1 + $0x20] sm:$0xff]  ;;  %v984_v12 = vld [vmem:[%s1469_s1 + $0x18] sm:$0xff]  ;;  %s858_s9 = sshll.u32 %s246_s8, 5  ;;  %s1005_s11 = sshll.u32 %s1229_s21, 5 }
  0x1c   : > { %s1037_s12 = smul.u32 36, %s250_s7  ;;  %v993_v10 = vld [vmem:[%s1470_s2 + $0x20] sm:$0xff]  ;;  %v992_v13 = vld [vmem:[%s1470_s2 + $0x18] sm:$0xff]  ;;  %v983_v16 = vld [vmem:[%s1469_s1 + $0x10] sm:$0xff]  ;;  %s1419_s10 = scalar_lea.vmem [#allocation5], %s858_s9 }
  0x1d   : > { %359 = vmatpush.bf16.msra.mxu0 %v987_v3  ;;  %1030 = vmatpush.bf16.msra.mxu3 %v987_v3  ;;  %v1001_v11 = vld [vmem:[#allocation2 + $0x20] sm:$0xff]  ;;  %v1000_v15 = vld [vmem:[#allocation2 + $0x18] sm:$0xff]  ;;  %v991_v17 = vld [vmem:[%s1470_s2 + $0x10] sm:$0xff]  ;;  %s760_s14 = scalar_lea.hbm %s1473_s5, %s1005_s11  ;;  %s761_s15 = sshll.u32 %s1419_s10, 4  ;;  %s762_s15 = int_to_ptr.vmem [resolvable:$true] %s761_s15 }
  0x1e   : > { %507 = vmatpush.bf16.msra.mxu1 %v995_v4  ;;  %s1361_s25 = scalar_lea.vmem %s1468_s0, %s1037_s12  ;;  %v999_v20 = vld [vmem:[#allocation2 + $0x10] sm:$0xff]  ;;  %v982_v21 = vld [vmem:[%s1469_s1 + $0x8] sm:$0xff]  ;;  %v981_v27 = vld [vmem:[%s1469_s1] sm:$0xff]  ;;  %s763_s16 = sshll.u32 %s760_s14, 4  ;;  %s764_s16 = int_to_ptr.hbm [resolvable:$true] %s763_s16 }
  0x1f   : > { %622 = vmatpush.bf16.msra.mxu2 %v1003_v5  ;;  %v977_v14 = vld [vmem:[%s1361_s25] sm:$0xff]  ;;  %v978_v18 = vld [vmem:[%s1361_s25 + $0x8] sm:$0xff]  ;;  %v979_v36 = vld [vmem:[%s1361_s25 + $0x10] sm:$0xff]  ;;  %s747_s17 = scalar_lea.sflag [#allocation4], %s246_s8  ;;  %s1169_s21 = sshra.s32 %s764_s16, 4  ;;  %s1170_s21 = int_to_ptr.hbm [resolvable:$true] %s1169_s21 }
  0x20   : > { %v421_v19 = vshll.u32 %v977_v14, 16  ;;  %v990_v22 = vld [vmem:[%s1470_s2 + $0x8] sm:$0xff]  ;;  %v419_v23 = vshrl.u32 %v977_v14, 16  ;;  %v426_v25 = vshll.u32 %v978_v18, 16  ;;  %v989_v28 = vld [vmem:[%s1470_s2] sm:$0xff]  ;;  %v560_v32 = vrot.slane %v977_v14, 1  ;;  %p1176_p5 = scmp.lt.s32.totalorder %s1170_s21, %s1473_s5 }
  0x21   : > { %360 = vmatpush.bf16.msra.mxu0 %v986_v6  ;;  %1031 = vmatpush.bf16.msra.mxu3 %v986_v6  ;;  %v998_v26 = vld [vmem:[#allocation2 + $0x8] sm:$0xff]  ;;  %v997_v31 = vld [vmem:[#allocation2] sm:$0xff]  ;;  %v561_v33 = vrot.slane %v978_v18, 1  ;;  %v430_v37 = vshrl.u32 %v978_v18, 16  ;;  %v434_v38 = vshll.u32 %v979_v36, 16  ;;  %v563_v41 = vrot.slane %v979_v36, 1 }
  0x22   : > { %508 = vmatpush.bf16.msra.mxu1 %v994_v7  ;;  %v423_v24 = vrot.slane %v421_v19, 1  ;;  %v428_v30 = vrot.slane %v426_v25, 1  ;;  %v980_v44 = vld [vmem:[%s1361_s25 + $0x18] sm:$0xff]  ;;  %v438_v45 = vshrl.u32 %v979_v36, 16  ;;  %v268_v50 = vld [vmem:[%s1361_s25 + $0x20] sm:$0x1] }
  0x23   : > { %623 = vmatpush.bf16.msra.mxu2 %v1002_v8  ;;  %v562_v35 = vsel %vm559_vm1, %v560_v32, %v561_v33  ;;  %v436_v40 = vrot.slane %v434_v38, 1  ;;  %v564_v43 = vsel %vm559_vm1, %v561_v33, %v563_v41  ;;  %v442_v46 = vshll.u32 %v980_v44, 16  ;;  %v1403_v62 = vld [vmem:[%s1472_s4] ss:$0 sm:$0xff]  ;;  %s1171_s24 = scalar_lea.hbm %s1170_s21, 32  ;;  %s1175_s25 = scalar_lea.hbm %s1473_s5, 64 }
  0x24   : > { %v424_v29 = vor.u32 %v423_v24, %v419_v23  ;;  %v432_v39 = vor.u32 %v430_v37, %v428_v30  ;;  %v565_v49 = vrot.slane %v980_v44, 1  ;;  %v415_v52 = vunpack.c.l.b16 %v268_v50  ;;  %p1172_p1 = scmp.ne.s32.totalorder %s1170_s21, %s1171_s24  ;;  %p1177_p6 = scmp.lt.s32.totalorder %s1175_s25, %s1171_s24 }
  0x25   : > { %361 = vmatpush.bf16.msra.mxu0 %v985_v9  ;;  %1032 = vmatpush.bf16.msra.mxu3 %v985_v9  ;;  %v440_v47 = vor.u32 %v438_v45, %v436_v40  ;;  %v444_v48 = vrot.slane %v442_v46, 1  ;;  %v446_v55 = vshrl.u32 %v980_v44, 16 }
  0x26   : > { %509 = vmatpush.bf16.msra.mxu1 %v993_v10  ;;  %v429_v34 = vsel %vm417_vm0, %v424_v29, %v428_v30  ;;  %v437_v42 = vsel %vm417_vm0, %v432_v39, %v436_v40  ;;  %v566_v53 = vsel %vm559_vm1, %v563_v41, %v565_v49  ;;  %v416_v54 = vpack.c.b16 %v415_v52, %v415_v52  ;;  %p1173_p2 = pnand %p1172_p1, %p1314_p4  ;;  %p1178_p7 = por %p1177_p6, %p1176_p5 }
  0x27   : > { %624 = vmatpush.bf16.msra.mxu2 %v1001_v11  ;;  %v445_v51 = vsel %vm417_vm0, %v440_v47, %v444_v48  ;;  %v448_v57 = vor.u32 %v446_v55, %v444_v48 }
  0x28   : > { %v450_v56 = vshll.u32 %v416_v54, 16  ;;  %v567_v59 = vrot.slane %v416_v54, 1  ;;  %p1174_p3 = pneg %p1173_p2 }
  0x29   : > { %362 = vmatpush.bf16.msra.mxu0 %v984_v12  ;;  %1033 = vmatpush.bf16.msra.mxu3 %v984_v12 }
  0x2a   : > { %510 = vmatpush.bf16.msra.mxu1 %v992_v13  ;;  %v452_v58 = vrot.slane %v450_v56, 1  ;;  %v568_v61 = vsel %vm559_vm1, %v565_v49, %v567_v59  ;;  %p1179_p9 = pnand %p1178_p7, %p1174_p3 }
  0x2b   : > { %625 = vmatpush.bf16.msra.mxu2 %v1000_v15 }
  0x2c   : > { %v453_v60 = vsel %vm417_vm0, %v448_v57, %v452_v58 }
  0x2d   : > { %363 = vmatpush.bf16.msra.mxu0 %v983_v16  ;;  %1034 = vmatpush.bf16.msra.mxu3 %v983_v16 }
  0x2e   : > { %511 = vmatpush.bf16.msra.mxu1 %v991_v17 }
  0x2f   : > { %626 = vmatpush.bf16.msra.mxu2 %v999_v20 }
  0x31   : > { %364 = vmatpush.bf16.msra.mxu0 %v982_v21  ;;  %1035 = vmatpush.bf16.msra.mxu3 %v982_v21 }
  0x32   : > { %512 = vmatpush.bf16.msra.mxu1 %v990_v22 }
  0x33   : > { %627 = vmatpush.bf16.msra.mxu2 %v998_v26 }
  0x35   : > { %365 = vmatpush.bf16.msra.mxu0 %v981_v27  ;;  %1036 = vmatpush.bf16.msra.mxu3 %v981_v27 }
  0x36   : > { %513 = vmatpush.bf16.msra.mxu1 %v989_v28 }
  0x37   : > { %628 = vmatpush.bf16.msra.mxu2 %v997_v31 }
  0x38   : > { %366 = vmatmul.bf16.vlgmr.msra.gmra.mxu0 %v977_v14  ;;  %371 = vmatmul.bf16.vlgmr.msra.gmra.mxu3 %v978_v18 }
  0x39   : > { %514 = vmatmul.bf16.vlgmr.msra.gmra.mxu1 %v429_v34 }
  0x3a   : > { %629 = vmatmul.bf16.vlgmr.msra.gmra.mxu2 %v562_v35 }
  0x48   : > { %376 = vmatmul.bf16.gmra.mxu3 %v979_v36 }
  0x49   : > { %519 = vmatmul.bf16.gmra.mxu1 %v437_v42 }
  0x4a   : > { %634 = vmatmul.bf16.gmra.mxu2 %v564_v43 }
  0x58   : > { %381 = vmatmul.bf16.gmra.mxu3 %v980_v44 }
  0x59   : > { %524 = vmatmul.bf16.gmra.mxu1 %v445_v51 }
  0x5a   : > { %639 = vmatmul.bf16.gmra.mxu2 %v566_v53 }
  0x69   : > { %529 = vmatmul.bf16.gmra.mxu1 %v453_v60 }
  0x6a   : > { %644 = vmatmul.bf16.gmra.mxu2 %v568_v61 }
  0xb5   : > { %v367_v63 = vpop.f32.mrf.mxu0 }
  0xb6   : > { %v515_v0 = vpop.f32.mrf.mxu1  ;;  %v390_v1 = vadd.f32 %v1403_v62, %v367_v63 }
  0xb8   : > { %v535_v2 = vadd.f32 %v515_v0, %v390_v1 }
  0xbb   : > { %v372_v4 = vpop.f32.mrf.mxu3 }
  0xbc   : > { %v392_v15 = vadd.f32 %v1403_v62, %v372_v4 }
  0xbd   : > { %v630_v3 = vpop.f32.mrf.mxu2  ;;  %v369_v6 = vpop.f32.mrf.mxu0 }
  0xbe   : > { %v650_v5 = vadd.f32 %v630_v3, %v535_v2  ;;  %v517_v7 = vpop.f32.mrf.mxu1  ;;  %v391_v9 = vadd.f32 %v1403_v62, %v369_v6 }
  0xc0   : > { %v658_v8 = vmul.f32 %v650_v5, %v650_v5  ;;  %v536_v12 = vadd.f32 %v517_v7, %v391_v9 }
  0xc2   : > { %v666_v10 = vmul.f32 %v658_v8, %v650_v5 }
  0xc3   : > { %v374_v18 = vpop.f32.mrf.mxu3 }
  0xc4   : > { %v674_v11 = vmul.f32 0.044715, %v666_v10  ;;  %v393_v32 = vadd.f32 %v1403_v62, %v374_v18 }
  0xc5   : > { %v632_v13 = vpop.f32.mrf.mxu2 }
  0xc6   : > { %v682_v14 = vadd.f32 %v674_v11, %v650_v5  ;;  %v651_v16 = vadd.f32 %v632_v13, %v536_v12  ;;  %v520_v17 = vpop.f32.mrf.mxu1 }
  0xc7   : > { %v537_v22 = vadd.f32 %v520_v17, %v392_v15 }
  0xc8   : > { %v690_v19 = vmul.f32 0.7978846, %v682_v14  ;;  %v659_v20 = vmul.f32 %v651_v16, %v651_v16 }
  0xca   : > { %v667_v21 = vmul.f32 %v659_v20, %v651_v16  ;;  %1109 = vtanh.f32 %v690_v19 }
  0xcb   : > { %v377_v30 = vpop.f32.mrf.mxu3 }
  0xcc   : > { %v675_v23 = vmul.f32 0.044715, %v667_v21  ;;  %v394_v39 = vadd.f32 %v1403_v62, %v377_v30 }
  0xcd   : > { %v635_v24 = vpop.f32.mrf.mxu2 }
  0xce   : > { %v683_v25 = vadd.f32 %v675_v23, %v651_v16  ;;  %v1408_v26 = vadd.f32 %v635_v24, %v537_v22  ;;  %v522_v27 = vpop.f32.mrf.mxu1 }
  0xcf   : > { %v538_v35 = vadd.f32 %v522_v27, %v393_v32 }
  0xd0   : > { %v691_v28 = vmul.f32 0.7978846, %v683_v25  ;;  %v660_v29 = vmul.f32 %v1408_v26, %v1408_v26  ;;  %v1110_v31 = vpop.eup %1109 }
  0xd1   : > { %v706_v36 = vadd.f32 1.0, %v1110_v31 }
  0xd2   : > { %1111 = vtanh.f32 %v691_v28  ;;  %v668_v33 = vmul.f32 %v660_v29, %v1408_v26 }
  0xd3   : > { %v714_v45 = vmul.f32 0.5, %v706_v36  ;;  %v379_v50 = vpop.f32.mrf.mxu3 }
  0xd4   : > { %v676_v34 = vmul.f32 0.044715, %v668_v33  ;;  %v395_v63 = vadd.f32 %v1403_v62, %v379_v50 }
  0xd5   : > { %v637_v37 = vpop.f32.mrf.mxu2  ;;  %v722_v52 = vmul.f32 %v714_v45, %v650_v5 }
  0xd6   : > { %v684_v38 = vadd.f32 %v676_v34, %v1408_v26  ;;  %v653_v40 = vadd.f32 %v637_v37, %v538_v35  ;;  %v525_v41 = vpop.f32.mrf.mxu1 }
  0xd7   : > { %v539_v48 = vadd.f32 %v525_v41, %v394_v39 }
  0xd8   : > { %v1112_v42 = vpop.eup %1111  ;;  %v692_v43 = vmul.f32 0.7978846, %v684_v38  ;;  %v661_v44 = vmul.f32 %v653_v40, %v653_v40 }
  0xd9   : > { %v707_v46 = vadd.f32 1.0, %v1112_v42 }
  0xda   : > { %v669_v47 = vmul.f32 %v661_v44, %v653_v40  ;;  %1113 = vtanh.f32 %v692_v43 }
  0xdb   : > { %v715_v49 = vmul.f32 0.5, %v707_v46  ;;  %v382_v4 = vpop.f32.mrf.mxu3 }
  0xdc   : > { %v677_v51 = vmul.f32 0.044715, %v669_v47  ;;  %v396_v7 = vadd.f32 %v1403_v62, %v382_v4 }
  0xdd   : > { %v723_v53 = vmul.f32 %v715_v49, %v651_v16  ;;  %v640_v54 = vpop.f32.mrf.mxu2 }
  0xde   : > { %v685_v55 = vadd.f32 %v677_v51, %v653_v40  ;;  %v654_v56 = vadd.f32 %v640_v54, %v539_v48  ;;  %v527_v57 = vpop.f32.mrf.mxu1 }
  0xdf   : > { %v1009_v58 = vpack.c.bf16 %v723_v53, %v722_v52  ;;  %v540_v2 = vadd.f32 %v527_v57, %v395_v63 }
  0xe0   : > { %v693_v59 = vmul.f32 0.7978846, %v685_v55  ;;  %v662_v60 = vmul.f32 %v654_v56, %v654_v56  ;;  %v1114_v61 = vpop.eup %1113 }
  0xe1   : > { %1010 = vst [vmem:[%s1419_s10] sm:$0xff] %v1009_v58   ;;  %v708_v3 = vadd.f32 1.0, %v1114_v61 }
  0xe2   : > { %1115 = vtanh.f32 %v693_v59  ;;  %v670_v0 = vmul.f32 %v662_v60, %v654_v56 }
  0xe3   : > { %v716_v13 = vmul.f32 0.5, %v708_v3  ;;  %v384_v25 = vpop.f32.mrf.mxu3 }
  0xe4   : > { %v678_v1 = vmul.f32 0.044715, %v670_v0  ;;  %v397_v31 = vadd.f32 %v1403_v62, %v384_v25 }
  0xe5   : > { %v642_v5 = vpop.f32.mrf.mxu2  ;;  %v724_v19 = vmul.f32 %v716_v13, %v1408_v26 }
  0xe6   : > { %v686_v6 = vadd.f32 %v678_v1, %v654_v56  ;;  %v655_v8 = vadd.f32 %v642_v5, %v540_v2  ;;  %v530_v9 = vpop.f32.mrf.mxu1 }
  0xe7   : > { %v541_v16 = vadd.f32 %v530_v9, %v396_v7 }
  0xe8   : > { %v1116_v10 = vpop.eup %1115  ;;  %v694_v11 = vmul.f32 0.7978846, %v686_v6  ;;  %v663_v12 = vmul.f32 %v655_v8, %v655_v8 }
  0xe9   : > { %v709_v14 = vadd.f32 1.0, %v1116_v10 }
  0xea   : > { %v671_v15 = vmul.f32 %v663_v12, %v655_v8  ;;  %1117 = vtanh.f32 %v694_v11 }
  0xeb   : > { %v717_v17 = vmul.f32 0.5, %v709_v14 }
  0xec   : > { %v679_v18 = vmul.f32 0.044715, %v671_v15 }
  0xed   : > { %v725_v20 = vmul.f32 %v717_v17, %v653_v40  ;;  %v645_v21 = vpop.f32.mrf.mxu2 }
  0xee   : > { %v687_v22 = vadd.f32 %v679_v18, %v655_v8  ;;  %v656_v23 = vadd.f32 %v645_v21, %v541_v16  ;;  %v532_v29 = vpop.f32.mrf.mxu1 }
  0xef   : > { %v1014_v24 = vpack.c.bf16 %v725_v20, %v724_v19  ;;  %v542_v34 = vadd.f32 %v532_v29, %v397_v31 }
  0xf0   : > { %v695_v27 = vmul.f32 0.7978846, %v687_v22  ;;  %v664_v28 = vmul.f32 %v656_v23, %v656_v23  ;;  %v1118_v30 = vpop.eup %1117 }
  0xf1   : > { %1026 = vst [vmem:[%s1419_s10 + $0x8] sm:$0xff] %v1014_v24   ;;  %v710_v35 = vadd.f32 1.0, %v1118_v30 }
  0xf2   : > { %1119 = vtanh.f32 %v695_v27  ;;  %v672_v32 = vmul.f32 %v664_v28, %v656_v23 }
  0xf3   : > { %v718_v41 = vmul.f32 0.5, %v710_v35 }
  0xf4   : > { %v680_v33 = vmul.f32 0.044715, %v672_v32 }
  0xf5   : > { %v647_v36 = vpop.f32.mrf.mxu2  ;;  %v726_v62 = vmul.f32 %v718_v41, %v654_v56 }
  0xf6   : > { %v688_v26 = vadd.f32 %v680_v33, %v656_v23  ;;  %v657_v37 = vadd.f32 %v647_v36, %v542_v34 }
  0xf8   : > { %v1120_v38 = vpop.eup %1119  ;;  %v696_v39 = vmul.f32 0.7978846, %v688_v26  ;;  %v665_v40 = vmul.f32 %v657_v37, %v657_v37 }
  0xf9   : > { %v711_v42 = vadd.f32 1.0, %v1120_v38 }
  0xfa   : > { %v673_v43 = vmul.f32 %v665_v40, %v657_v37  ;;  %1121 = vtanh.f32 %v696_v39 }
  0xfb   : > { %v719_v44 = vmul.f32 0.5, %v711_v42 }
  0xfc   : > { %v681_v45 = vmul.f32 0.044715, %v673_v43 }
  0xfd   : > { %v727_v46 = vmul.f32 %v719_v44, %v655_v8 }
  0xfe   : > { %v689_v47 = vadd.f32 %v681_v45, %v657_v37 }
  0xff   : > { %v1019_v48 = vpack.c.bf16 %v727_v46, %v726_v62 }
 0x100   : > { %v697_v49 = vmul.f32 0.7978846, %v689_v47  ;;  %v1122_v50 = vpop.eup %1121 }
 0x101   : > { %1027 = vst [vmem:[%s1419_s10 + $0x10] sm:$0xff] %v1019_v48   ;;  %v712_v51 = vadd.f32 1.0, %v1122_v50 }
 0x102   : > { %1123 = vtanh.f32 %v697_v49 }
 0x103   : > { %v720_v53 = vmul.f32 0.5, %v712_v51 }
 0x105   : > { %v728_v56 = vmul.f32 %v720_v53, %v656_v23 }
 0x108   : > { %v1124_v52 = vpop.eup %1123 }
 0x109   : > { %v713_v54 = vadd.f32 1.0, %v1124_v52 }
 0x10b   : > { %v721_v55 = vmul.f32 0.5, %v713_v54 }
 0x10d   : > { %v729_v57 = vmul.f32 %v721_v55, %v657_v37 }
 0x10f   : > { %v1024_v58 = vpack.c.bf16 %v729_v57, %v728_v56 }
 0x111   : > { %1028 = vst [vmem:[%s1419_s10 + $0x18] sm:$0xff] %v1024_v58  }
 0x112   : > { %1182 = shalt.err (!%p1179_p9)
}
 0x113   : > { %s1242_s8 = smov 64   ;;  %s1243_s10 = smov 4  }
 0x114   : > { %1042 = dma.vmem_to_hbm [thread:$0]  (%p1314_p4), %s762_s15, 512, %s764_s16, %s747_s17, %s1242_s8, %s1242_s8, %s1243_s10  }
 0x115 PF: > { %p1054_p10 = scmp.ge.s32.totalorder %s1237_s23, 2  ;;  %s778_s11 = sand.u32 1, %s1217_s18  }
 0x116   : > { %s779_s12 = scalar_lea.sflag [#allocation4], %s778_s11 }
 0x117   : > { %p1049_p11 = pnand %p1054_p10, %p1321_p8 }
 0x119   : > { %p1050_p12 = pneg %p1049_p11 }
 0x11b   : > { %1212 = dma.done.wait (%p1050_p12), %s779_s12, 512  }
 0x11c   : > { %1214 = vsyncadd (%p1050_p12), %s779_s12, 4294966784  ;;  %s19_s23 = sadd.s32 1, %s1237_s23   ;;  %s1476_s18 = smov %s1221_s19 }
 0x11d   : > { %p16_p13 = scmp.ge.s32.totalorder %s19_s23, 4   ;;  %s1477_s19 = smov %s1225_s20 }
 0x11e   : > { %s1478_s20 = smov %s1327_s6  ;;  %s1479_s21 = smov %s1233_s22 }
 0x11f   : > { %s1480_s22 = smov %s1482_s26  ;;  %18 = sbr.rel (!%p16_p13) target bundleno = 5 (0x5), region = 81 }
 0x124   :  { %785 = vsyncpa [#allocation3], 1 }
 0x125   :  { %787 = vsyncpa [#allocation3 + $0x1], 1 }
 0x126   :  { %788 = vsyncpa [#allocation4], 1 }
 0x127   :  { %790 = vsyncpa [#allocation4 + $0x1], 1 }

</bundles_post_ra>
